<compile_context>
chip_gen: v7x
topology: tpu7x:2x2x1
jax: 0.10.0
libtpu: 0.0.40
codegen_flags: <defaults>
</compile_context>

<pallas_src>
import functools
import math

import jax
import jax.numpy as jnp
from jax.experimental import pallas as pl
from jax.experimental.pallas import tpu as pltpu

_INV_SQRT2 = 1.0 / math.sqrt(2.0)
_TANH_GELU_C = math.sqrt(2.0 / math.pi)
_LANE = 128
_SUBLANE = 8
# Candidate lane widths for the flattened path, widest first (lane-dense
# output is the biggest single lever for streaming kernels).
_LANE_WIDTHS = (4096, 2048, 1024, 512, 256, 128)
# Don't take the "keep original minor dim" path for absurdly wide rows.
_MAX_LANE_WIDTH = 16384
# Keep at least this many grid steps when there is enough work, so the
# BlockSpec pipeline actually overlaps DMA with compute.
_MIN_STEPS = 4


def _device_kind():
    try:
        return jax.devices()[0].device_kind.lower()
    except Exception:
        return ""


def _is_v7x():
    kind = _device_kind()
    return ("v7" in kind) or ("7x" in kind)


def _default_block_bytes():
    # v7x: ~3.2 TB/s per TC makes the ~0.35 us fixed per-step overhead a big
    # fraction of a 2 MiB step -> 4 MiB blocks (in+out double-buffered =
    # 16 MiB, under the 32 MiB default scoped VMEM).  v5e/v6e: 2 MiB blocks
    # (85% roofline plateau; 8 MiB total fits v5e's 16 MiB default).
    return (4 * 1024 * 1024) if _is_v7x() else (2 * 1024 * 1024)


def _auto_approx(dtype):
    # Route the transcendental to the EUP where the exact-erf VALU polynomial
    # would saturate the VALU slot before the HBM roofline:
    #   * v7x (any dtype): f32 budget is only ~10-14 VALU ops/elem
    #   * v6e with bf16 inputs: bf16 halves bytes/elem -> ~11 ops/elem budget
    # Everywhere else keep exact erf (hidden under DMA, matches torch.erf).
    kind = _device_kind()
    if _is_v7x():
        return True
    if ("v6" in kind) and jnp.dtype(dtype) == jnp.bfloat16:
        return True
    return False


def _sgelu_kernel(x_ref, o_ref, *, approx):
    x = x_ref[...]
    xf = x if x.dtype == jnp.float32 else x.astype(jnp.float32)
    if approx:
        # EUP-routed tanh-GELU approximation (|err| ~1e-3 absolute).
        x3 = xf * xf * xf
        g = 0.5 * xf * (1.0 + jnp.tanh(_TANH_GELU_C * (xf + 0.044715 * x3)))
    else:
        # Exact erf to match torch.erf semantics (VALU polynomial).
        g = xf * 0.5 * (1.0 + jax.lax.erf(xf * _INV_SQRT2))
    o_ref[...] = jnp.maximum(g, xf).astype(o_ref.dtype)


def _pick_width(n_pad):
    """Widest lane extent dividing n_pad, preferring one that still leaves
    enough rows for a multi-step pipelined grid."""
    dividing = [w for w in _LANE_WIDTHS if n_pad % w == 0]
    # n_pad is a multiple of 128 by construction, so `dividing` is non-empty.
    for w in dividing:
        if n_pad // w >= _MIN_STEPS * _SUBLANE:
            return w
    return dividing[0]


def _pick_block_rows(rows, width, itemsize, block_bytes):
    """Rows per block: large enough to amortize the ~0.35 us per-step cost,
    small enough to keep >= _MIN_STEPS pipelined steps and fit VMEM."""
    # VMEM budget cap (multiple of 8 sublanes).
    cap = max(_SUBLANE,
              (block_bytes // max(1, width * itemsize)) // _SUBLANE * _SUBLANE)
    # Keep the grid multi-step when there is enough work: a 1-step grid
    # serializes copy-in / compute / copy-out and confines v7x to one TC.
    if rows >= _MIN_STEPS * _SUBLANE:
        cap = min(cap,
                  max(_SUBLANE, (rows // _MIN_STEPS) // _SUBLANE * _SUBLANE))
    if rows <= cap:
        return rows
    # Prefer a block that divides rows exactly (no masked partial final
    # block / ragged last DMA), as long as it doesn't shrink the block much.
    for cand in range(cap, _SUBLANE - 1, -_SUBLANE):
        if rows % cand == 0:
            if cand * 2 >= cap:
                return cand
            break
    return cap


def sgelu(x, *, approx=None, block_bytes=None):
    """Apply SGELU elementwise to an array of any shape (NCHW expected).

    approx=None picks exact erf except on v7x / bf16-on-v6e (EUP tanh-GELU).
    Pass approx=False to force bit-faithful torch.erf semantics everywhere.
    """
    orig_shape = x.shape
    orig_dtype = x.dtype
    n = x.size
    if n == 0:
        return x
    if approx is None:
        approx = _auto_approx(orig_dtype)
    if block_bytes is None:
        block_bytes = _default_block_bytes()
    itemsize = jnp.dtype(orig_dtype).itemsize

    # ---- layout plumbing: present a lane-dense 2-D slab without forcing an
    # HBM relayout copy in the wrapper -------------------------------------
    if (x.ndim >= 2
            and orig_shape[-1] % _LANE == 0
            and orig_shape[-1] <= _MAX_LANE_WIDTH
            and (x.ndim == 2 or orig_shape[-2] % _SUBLANE == 0)):
        # Collapse only the leading dims: (..., S, W) -> (prod*S, W).  The
        # (8,128) tiling only touches the last two dims and S % 8 == 0, so
        # this reshape is layout-preserving (no relayout copy).
        width = orig_shape[-1]
        rows = n // width
        x2d = x.reshape(rows, width)
        n_pad = n
    else:
        # Flatten to a wide lane-dense slab.
        # TODO(synk): verify in xprof that this ravel/reshape lowers to a
        # bitcast (not a relayout copy) for the W<128 NCHW case; if a copy
        # shows up, block over collapsed leading dims with the original
        # (narrow) last dim instead.
        flat = x.reshape(-1)
        if n % _LANE != 0:
            n_pad = pl.cdiv(n, _SUBLANE * _LANE) * (_SUBLANE * _LANE)
            flat = jnp.pad(flat, (0, n_pad - n))  # SGELU(0) == 0 -> pad safe
        else:
            n_pad = n
        width = _pick_width(n_pad)
        rows = n_pad // width
        x2d = flat.reshape(rows, width)

    block_rows = _pick_block_rows(rows, width, itemsize, block_bytes)
    grid = (pl.cdiv(rows, block_rows),)

    out2d = pl.pallas_call(
        functools.partial(_sgelu_kernel, approx=approx),
        out_shape=jax.ShapeDtypeStruct((rows, width), orig_dtype),
        grid_spec=pltpu.PrefetchScalarGridSpec(
            num_scalar_prefetch=0,
            grid=grid,
            in_specs=[pl.BlockSpec((block_rows, width), lambda i: (i, 0))],
            out_specs=pl.BlockSpec((block_rows, width), lambda i: (i, 0)),
        ),
        compiler_params=pltpu.CompilerParams(
            # On v7x, confirm in a trace that this shards the 1-D grid over
            # both TensorCores; if only one TC is active, switch this axis to
            # pltpu.CORE_PARALLEL.
            dimension_semantics=("parallel",),
        ),
    )(x2d)

    if n_pad != n:
        return out2d.reshape(-1)[:n].reshape(orig_shape)
    return out2d.reshape(orig_shape)


def sgelu_ref(x):
    xf = x.astype(jnp.float32)
    g = xf * 0.5 * (1.0 + jax.lax.erf(xf * _INV_SQRT2))
    return jnp.maximum(g, xf).astype(x.dtype)


if __name__ == "__main__":
    key = jax.random.PRNGKey(0)

    # Primary case: NCHW input like the PyTorch module would see (exact erf).
    x = jax.random.normal(key, (2, 4, 16, 16), dtype=jnp.float32) * 3.0
    y = jax.block_until_ready(sgelu(x, approx=False))
    y_ref = sgelu_ref(x)
    assert y.shape == x.shape and y.dtype == x.dtype
    assert jnp.allclose(y, y_ref, atol=1e-5, rtol=1e-5)

    # EUP-approx path (what v7x / bf16-on-v6e would auto-select): looser tol.
    y_approx = jax.block_until_ready(sgelu(x, approx=True))
    assert jnp.allclose(y_approx, y_ref, atol=5e-3, rtol=0.0)

    k1, k2, k3 = jax.random.split(key, 3)

    # Size not divisible by 128 (exercises the pad path).
    x_odd = jax.random.normal(k1, (2, 3, 5, 7), dtype=jnp.float32) * 3.0
    y_odd = jax.block_until_ready(sgelu(x_odd, approx=False))
    assert jnp.allclose(y_odd, sgelu_ref(x_odd), atol=1e-5, rtol=1e-5)

    # Lane-aligned minor dim -> collapse-leading-dims path, multi-block grid
    # with an exact-dividing block (small block_bytes to force several steps).
    x_big = jax.random.normal(k2, (2, 10, 32, 128), dtype=jnp.float32) * 3.0
    y_big = jax.block_until_ready(
        sgelu(x_big, approx=False, block_bytes=64 * 1024))
    assert jnp.allclose(y_big, sgelu_ref(x_big), atol=1e-5, rtol=1e-5)

    # bf16 input (internal f32 math, exact erf).
    x_bf = (jax.random.normal(k3, (2, 4, 16, 16), dtype=jnp.float32) * 3.0
            ).astype(jnp.bfloat16)
    y_bf = jax.block_until_ready(sgelu(x_bf, approx=False))
    assert y_bf.dtype == jnp.bfloat16
    assert jnp.allclose(y_bf.astype(jnp.float32),
                        sgelu_ref(x_bf).astype(jnp.float32),
                        atol=2e-2, rtol=2e-2)

    print("KERNEL_OK")
</pallas_src>

<mosaic_0001>
module attributes {stable_mosaic.version = 11 : i64} {
  func.func @_sgelu_kernel(%arg0: i32, %arg1: memref<1x2048xf32, #tpu.memory_space<vmem>>, %arg2: memref<1x2048xf32, #tpu.memory_space<vmem>>) attributes {dimension_semantics = [#tpu.dimension_semantics<parallel>], iteration_bounds = array<i64: 1>, scalar_prefetch = 0 : i64, scratch_operands = 0 : i64, tpu.core_type = #tpu.core_type<tc>, window_params = [{transform_indices = @transform_0, window_bounds = array<i64: 1, 2048>}, {transform_indices = @transform_1, window_bounds = array<i64: 1, 2048>}]} {
    %c0 = arith.constant 0 : index
    %c0_0 = arith.constant 0 : index
    %0 = vector.load %arg1[%c0, %c0_0] : memref<1x2048xf32, #tpu.memory_space<vmem>>, vector<1x2048xf32>
    %cst = arith.constant 5.000000e-01 : f32
    %1 = vector.broadcast %cst : f32 to vector<1x2048xf32>
    %2 = arith.mulf %0, %1 : vector<1x2048xf32>
    %cst_1 = arith.constant 0.707106769 : f32
    %3 = vector.broadcast %cst_1 : f32 to vector<1x2048xf32>
    %4 = arith.mulf %0, %3 : vector<1x2048xf32>
    %5 = math.erf %4 : vector<1x2048xf32>
    %cst_2 = arith.constant 1.000000e+00 : f32
    %6 = vector.broadcast %cst_2 : f32 to vector<1x2048xf32>
    %7 = arith.addf %6, %5 : vector<1x2048xf32>
    %8 = arith.mulf %2, %7 : vector<1x2048xf32>
    %9 = arith.maximumf %8, %0 : vector<1x2048xf32>
    %c0_3 = arith.constant 0 : index
    %c0_4 = arith.constant 0 : index
    %10 = vector.load %arg2[%c0_3, %c0_4] : memref<1x2048xf32, #tpu.memory_space<vmem>>, vector<1x2048xf32>
    tpu.vector_store %arg2[%c0_3, %c0_4], %9 {strides = array<i32>} : memref<1x2048xf32, #tpu.memory_space<vmem>>, vector<1x2048xf32>,
    return
  }
  func.func @transform_0(%arg0: i32) -> (i32, i32) {
    %c0_i32 = arith.constant 0 : i32
    %c0_i32_0 = arith.constant 0 : i32
    return %arg0, %c0_i32 : i32, i32
  }
  func.func @transform_1(%arg0: i32) -> (i32, i32) {
    %c0_i32 = arith.constant 0 : i32
    %c0_i32_0 = arith.constant 0 : i32
    return %arg0, %c0_i32 : i32, i32
  }
}

</mosaic_0001>

<bundles_post_ra>
// kernel: tpu_custom_call.1
= control target key start
LH: loop header
LB: loop body
LE: loop exit
PB: predicated region body
PF: predicated region fallthrough
CT: control target
= control target key end

     0   :  { %6 = vsyncpa [#allocation3], 0  ;;  %s142_s0 = inlined_call_operand.hbm [shape: f32[1,2048], index: 0, kind: input, shape index: {}]   ;;  %s143_s1 = inlined_call_operand.hbm [shape: f32[1,2048], index: 1, kind: output, shape index: {}]  }
   0x1   :  { %7 = vsyncpa [#allocation4], 0  ;;  %s106_s6 = smov [#allocation2]   ;;  %s58_s10 = scalar_lea.hbm %s142_s0, 256 }
   0x2   :  { %s14_s7 = sshll.u32 %s106_s6, 4  ;;  %p59_p0 = scmp.ne.s32.totalorder %s142_s0, %s58_s10  ;;  %s15_s7 = int_to_ptr.vmem [resolvable:$true] %s14_s7 }
   0x3   :  { %p62_p1 = scmp.lt.u32.totalorder %s58_s10, %s142_s0 }
   0x5   :  { %p64_p2 = pnand %p62_p1, %p59_p0 }
   0x7   :  { %67 = shalt.err (!%p64_p2)
}
   0x8   :  { %s68_s15 = scalar_lea.vmem %s15_s7, 256  ;;  %p73_p4 = scmp.lt.s32.totalorder %s15_s7, %s15_s7 }
   0x9   :  { %p69_p3 = scmp.ne.s32.totalorder %s15_s7, %s68_s15  ;;  %p74_p5 = scmp.lt.s32.totalorder %s68_s15, %s68_s15 }
   0xb   :  { %p75_p6 = por %p74_p5, %p73_p4 }
   0xd   :  { %p76_p7 = pnand %p75_p6, %p69_p3 }
   0xf   :  { %79 = shalt.err (!%p76_p7)
}
  0x10   :  { %17 = dma.hbm_to_vmem [thread:$0]  %s142_s0, 256, %s15_s7, [#allocation3]  }
  0x11   :  { %102 = dma.done.wait [#allocation3], 256  }
  0x12   :  { %103 = vsyncadd [#allocation3], 4294967040  ;;  %v21_v0 = vld [vmem:[#allocation2] sm:$0xff]  ;;  %v22_v1 = vld [vmem:[#allocation2 + $0x8] sm:$0xff]  ;;  %s107_s18 = smov [#allocation5]  }
  0x13   :  { %v25_v2 = vmul.f32 0.70710677, %v21_v0  ;;  %v26_v3 = vmul.f32 0.70710677, %v22_v1  ;;  %v23_v4 = vmul.f32 0.5, %v21_v0  ;;  %v24_v6 = vmul.f32 0.5, %v22_v1 }
  0x14   :  { %s43_s19 = sshll.u32 %s107_s18, 4  ;;  %s44_s19 = int_to_ptr.vmem [resolvable:$true] %s43_s19 }
  0x15   :  { %54 = verf.f32 %v25_v2  ;;  %s80_s0 = scalar_lea.vmem %s44_s19, 256  ;;  %p85_p9 = scmp.lt.s32.totalorder %s44_s19, %s44_s19 }
  0x16   :  { %56 = verf.f32 %v26_v3  ;;  %p81_p8 = scmp.ne.s32.totalorder %s44_s19, %s80_s0  ;;  %p86_p10 = scmp.lt.s32.totalorder %s80_s0, %s80_s0 }
  0x18   :  { %p87_p11 = por %p86_p10, %p85_p9 }
  0x1a   :  { %p88_p12 = pnand %p87_p11, %p81_p8 }
  0x1f   :  { %v55_v5 = vpop.eup %54 }
  0x20   :  { %v57_v7 = vpop.eup %56  ;;  %v29_v8 = vadd.f32 1.0, %v55_v5 }
  0x21   :  { %v30_v9 = vadd.f32 1.0, %v57_v7 }
  0x22   :  { %v31_v10 = vmul.f32 %v29_v8, %v23_v4 }
  0x23   :  { %v32_v11 = vmul.f32 %v30_v9, %v24_v6 }
  0x24   :  { %v33_v12 = vmax.f32 %v31_v10, %v21_v0 }
  0x25   :  { %v34_v13 = vmax.f32 %v32_v11, %v22_v1 }
  0x26   :  { %35 = vst [vmem:[#allocation5] sm:$0xff] %v33_v12 }
  0x27   :  { %36 = vst [vmem:[#allocation5 + $0x8] sm:$0xff] %v34_v13 }
  0x28   :  { %91 = shalt.err (!%p88_p12)
}
  0x29   :  { %s92_s22 = scalar_lea.hbm %s143_s1, 256 }
  0x2a   :  { %p93_p13 = scmp.ne.s32.totalorder %s143_s1, %s92_s22  ;;  %p96_p0 = scmp.lt.u32.totalorder %s92_s22, %s143_s1 }
  0x2c   :  { %p98_p1 = pnand %p96_p0, %p93_p13 }
  0x2e   :  { %101 = shalt.err (!%p98_p1)
}
  0x2f   :  { %46 = dma.vmem_to_hbm [thread:$0]  %s44_s19, 256, %s143_s1, [#allocation4]  }
  0x30   :  { %104 = dma.done.wait [#allocation4], 256  }
  0x31   :  { %105 = vsyncadd [#allocation4], 4294967040 }
  0x32   :  { %50 = vsyncpa [#allocation3], 1 }
  0x33   :  { %51 = vsyncpa [#allocation4], 1 }

</bundles_post_ra>
